<compile_context>
chip_gen: v7x
topology: tpu7x:2x2x1
jax: 0.10.0
libtpu: 0.0.40
codegen_flags: <defaults>
</compile_context>

<pallas_src>
import functools
import math

import jax
import jax.numpy as jnp
from jax import lax
from jax.experimental import pallas as pl
from jax.experimental.pallas import tpu as pltpu

_S = 64.0     # arcface scale
_M = 0.5      # arcface margin
_EPS = 1e-7   # clamp eps used by the torch reference
_COS_M = math.cos(_M)
_SIN_M = math.sin(_M)
_NEG_BIG = -1e30  # mask value for padded classes (finite, avoids inf-inf NaNs)


def _round_up(x, m):
    return (x + m - 1) // m * m


# ----------------------------------------------------------------------------- kernels


def _arc_embed_kernel(x_ref, wt_ref, invw_ref, wf_ref):
    """One C-tile of cosine logits: wf = (x @ W^T) * inv||x|| * inv||w||."""
    x = x_ref[...]                                                   # [B, D] f32
    ss = jnp.sum(x * x, axis=-1, keepdims=True)                      # [B, 1]
    inv_x = 1.0 / jnp.maximum(jnp.sqrt(ss), 1e-12)                   # F.normalize semantics
    raw = jnp.dot(x.astype(jnp.bfloat16), wt_ref[...],               # bf16 MXU, f32 acc
                  preferred_element_type=jnp.float32)                # [B, CT]
    wf_ref[...] = raw * inv_x * invw_ref[...]


def _arc_loss_kernel(num_classes, x_ref, wt_ref, invw_ref, lbl_ref, loss_ref,
                     m_sc, l_sc, t_sc):
    """Arcface loss with online logsumexp over C tiles (grid axis 0 = class tiles)."""
    c = pl.program_id(0)
    nc = pl.num_programs(0)
    ct = wt_ref.shape[1]

    @pl.when(c == 0)
    def _init():
        m_sc[...] = jnp.full_like(m_sc, -jnp.inf)   # running max of s*wf
        l_sc[...] = jnp.zeros_like(l_sc)            # running sum of exp(s*wf - max)
        t_sc[...] = jnp.zeros_like(t_sc)            # target cosine wf[i, y_i]

    x = x_ref[...]                                                   # [B, D] f32
    B = x.shape[0]
    ss = jnp.sum(x * x, axis=-1, keepdims=True)
    inv_x = 1.0 / jnp.maximum(jnp.sqrt(ss), 1e-12)

    raw = jnp.dot(x.astype(jnp.bfloat16), wt_ref[...],
                  preferred_element_type=jnp.float32)                # [B, CT]
    wf = raw * inv_x * invw_ref[...]                                 # cosine logits tile
    logits = _S * wf

    cls_ids = c * ct + lax.broadcasted_iota(jnp.int32, (B, ct), 1)
    valid = cls_ids < num_classes
    logits = jnp.where(valid, logits, _NEG_BIG)                      # drop padded classes

    labels = lbl_ref[...]                                            # [B, 1] int32
    onehot = (cls_ids == labels).astype(jnp.float32)
    t_sc[...] += jnp.sum(wf * onehot, axis=-1, keepdims=True)        # picks target tile only

    # online logsumexp over all valid classes (target included)
    m_new = jnp.maximum(m_sc[...], jnp.max(logits, axis=-1, keepdims=True))
    alpha = jnp.exp(m_sc[...] - m_new)
    l_sc[...] = alpha * l_sc[...] + jnp.sum(jnp.exp(logits - m_new),
                                            axis=-1, keepdims=True)
    m_sc[...] = m_new

    @pl.when(c == nc - 1)
    def _finalize():
        m_all = m_sc[...]
        l_all = l_sc[...]
        cos_t = t_sc[...]
        cos_c = jnp.clip(cos_t, -1.0 + _EPS, 1.0 - _EPS)
        numer = _S * (cos_c * _COS_M - jnp.sqrt(1.0 - cos_c * cos_c) * _SIN_M)
        # sum_{j != y} exp(s*wf_j) = (l_all - exp(s*wf_y - m_all)) * exp(m_all)
        excl = jnp.maximum(l_all - jnp.exp(_S * cos_t - m_all), 0.0)
        log_excl = jnp.log(excl) + m_all
        # stable log(exp(numer) + excl)
        mx = jnp.maximum(numer, log_excl)
        log_denom = mx + jnp.log(jnp.exp(numer - mx) + jnp.exp(log_excl - mx))
        loss_ref[...] = jnp.broadcast_to(-jnp.mean(numer - log_denom), (1, 1))


# ----------------------------------------------------------------------------- wrapper


class Classifier:
    """JAX/Pallas port of Classifier(input_size, output_size) with an arcface head."""

    def __init__(self, input_size, output_size, key, c_tile=512):
        bound = 1.0 / float(input_size) ** 0.5
        self.in_features = input_size
        self.num_classes = output_size
        # nn.Linear(in, out, bias=False).weight is [out, in]; torch-default uniform init.
        self.weight = jax.random.uniform(
            key, (output_size, input_size), jnp.float32, -bound, bound)

        # ---- one-time layout plumbing for the kernels ----
        # Class-tile size: multiple of 128 lanes; ~512 hits the HBM roofline sweet spot
        # while staying far under the 32 MiB scoped-VMEM budget even on v7x.
        self.c_tile = min(c_tile, _round_up(output_size, 128))
        self.c_pad = _round_up(output_size, self.c_tile)
        # [D, C_pad] bf16 transposed weights: contraction on RHS dim 0 feeds the MXU
        # directly (no per-step XLU relayout), and bf16 halves HBM/VMEM traffic.
        wt = jnp.zeros((input_size, self.c_pad), jnp.bfloat16)
        self.wt = wt.at[:, :output_size].set(self.weight.T.astype(jnp.bfloat16))
        # f32 inverse class-weight norms (kept f32 for fidelity); 0 for padded columns.
        inv_w = 1.0 / jnp.maximum(
            jnp.sqrt(jnp.sum(self.weight * self.weight, axis=1)), 1e-12)
        self.inv_w = jnp.zeros((1, self.c_pad), jnp.float32).at[0, :output_size].set(inv_w)

    # ---- embed path: cosine logits, no loss math, lane-dense [B, C_TILE] output ----
    def _embed(self, x):
        B, D = x.shape
        grid = (self.c_pad // self.c_tile,)
        wf = pl.pallas_call(
            _arc_embed_kernel,
            out_shape=jax.ShapeDtypeStruct((B, self.c_pad), jnp.float32),
            grid_spec=pltpu.PrefetchScalarGridSpec(
                num_scalar_prefetch=0,
                grid=grid,
                in_specs=[
                    pl.BlockSpec((B, D), lambda c: (0, 0)),               # x (resident)
                    pl.BlockSpec((D, self.c_tile), lambda c: (0, c)),     # W^T tile
                    pl.BlockSpec((1, self.c_tile), lambda c: (0, c)),     # inv||w|| tile
                ],
                out_specs=pl.BlockSpec((B, self.c_tile), lambda c: (0, c)),
            ),
            compiler_params=pltpu.CompilerParams(
                dimension_semantics=("parallel",),       # v7x: shard C tiles across TCs
                vmem_limit_bytes=32 * 1024 * 1024),
        )(x.astype(jnp.float32), self.wt, self.inv_w)
        return wf[:, :self.num_classes]

    # ---- loss path: no [B, C] HBM writeback, online logsumexp over C tiles ----
    def _loss(self, x, labels):
        B, D = x.shape
        grid = (self.c_pad // self.c_tile,)
        lbl = labels.astype(jnp.int32).reshape(B, 1)
        loss = pl.pallas_call(
            functools.partial(_arc_loss_kernel, self.num_classes),
            out_shape=jax.ShapeDtypeStruct((1, 1), jnp.float32),
            grid_spec=pltpu.PrefetchScalarGridSpec(
                num_scalar_prefetch=0,
                grid=grid,
                in_specs=[
                    pl.BlockSpec((B, D), lambda c: (0, 0)),               # x (resident)
                    pl.BlockSpec((D, self.c_tile), lambda c: (0, c)),     # W^T tile
                    pl.BlockSpec((1, self.c_tile), lambda c: (0, c)),     # inv||w|| tile
                    pl.BlockSpec((B, 1), lambda c: (0, 0)),               # labels (resident)
                ],
                out_specs=pl.BlockSpec((1, 1), lambda c: (0, 0)),
                scratch_shapes=[pltpu.VMEM((B, 1), jnp.float32)] * 3,     # m, l, target-cos
            ),
            compiler_params=pltpu.CompilerParams(
                dimension_semantics=("arbitrary",),      # reduction over C tiles
                vmem_limit_bytes=32 * 1024 * 1024),
        )(x.astype(jnp.float32), self.wt, self.inv_w, lbl)
        return loss[0, 0]

    def __call__(self, x, labels=None, embed=False):
        if embed:
            return self._embed(x)
        if labels is None:
            raise ValueError("labels are required when embed=False")
        return self._loss(x, labels)


# ----------------------------------------------------------------------------- test


def _reference(x, w, labels):
    """Pure-JAX f32 reference matching the torch module."""
    xn = x / jnp.maximum(jnp.linalg.norm(x, axis=1, keepdims=True), 1e-12)
    wn = w / jnp.maximum(jnp.linalg.norm(w, axis=1, keepdims=True), 1e-12)
    wf = xn @ wn.T
    B = x.shape[0]
    tgt = wf[jnp.arange(B), labels]
    tgt_c = jnp.clip(tgt, -1.0 + _EPS, 1.0 - _EPS)
    numer = _S * jnp.cos(jnp.arccos(tgt_c) + _M)
    excl = jnp.sum(jnp.exp(_S * wf), axis=1) - jnp.exp(_S * tgt)
    L = numer - jnp.log(jnp.exp(numer) + excl)
    return wf, -jnp.mean(L)


if __name__ == "__main__":
    B, D, C = 8, 32, 16   # batch, input_size (feature dim), output_size (num classes)
    key = jax.random.PRNGKey(0)
    k_w, k_x, k_l = jax.random.split(key, 3)

    clf = Classifier(D, C, k_w)
    x = jax.random.normal(k_x, (B, D), jnp.float32)
    labels = jax.random.randint(k_l, (B,), 0, C, jnp.int32)

    loss = clf(x, labels)               # training path: scalar arcface loss
    embeds = clf(x, embed=True)         # embed path: [B, C] cosine logits
    jax.block_until_ready((loss, embeds))

    # lightweight fidelity check vs. f32 reference (bf16 MXU inputs => small deviation)
    wf_ref, loss_ref = _reference(x, clf.weight, labels)
    assert embeds.shape == (B, C) and loss.shape == ()
    assert bool(jnp.all(jnp.isfinite(embeds))) and bool(jnp.isfinite(loss))
    assert float(jnp.max(jnp.abs(embeds - wf_ref))) < 2e-2
    assert float(jnp.abs(loss - loss_ref)) < 0.5 + 0.05 * float(jnp.abs(loss_ref))
    print("KERNEL_OK")
</pallas_src>

<mosaic_0001>
module attributes {stable_mosaic.version = 11 : i64} {
  func.func @_arc_loss_kernel(%arg0: i32, %arg1: memref<8x32xf32, #tpu.memory_space<vmem>>, %arg2: memref<32x128xbf16, #tpu.memory_space<vmem>>, %arg3: memref<1x128xf32, #tpu.memory_space<vmem>>, %arg4: memref<8x1xi32, #tpu.memory_space<vmem>>, %arg5: memref<1x1xf32, #tpu.memory_space<vmem>>, %arg6: memref<8x1xf32, #tpu.memory_space<vmem>>, %arg7: memref<8x1xf32, #tpu.memory_space<vmem>>, %arg8: memref<8x1xf32, #tpu.memory_space<vmem>>) attributes {dimension_semantics = [#tpu.dimension_semantics<arbitrary>], iteration_bounds = array<i64: 1>, scalar_prefetch = 0 : i64, scratch_operands = 3 : i64, tpu.core_type = #tpu.core_type<tc>, window_params = [{pipeline_mode = #tpu.pipeline_mode<synchronous>, transform_indices = @transform_0, window_bounds = array<i64: 8, 32>}, {transform_indices = @transform_1, window_bounds = array<i64: 32, 128>}, {transform_indices = @transform_2, window_bounds = array<i64: 1, 128>}, {pipeline_mode = #tpu.pipeline_mode<synchronous>, transform_indices = @transform_3, window_bounds = array<i64: 8, 1>}, {pipeline_mode = #tpu.pipeline_mode<synchronous>, transform_indices = @transform_4, window_bounds = array<i64: 1, 1>}]} {
    %c0_i32 = arith.constant 0 : i32
    %0 = arith.cmpi eq, %arg0, %c0_i32 : i32
    %1 = arith.extui %0 : i1 to i32
    %c0_i32_0 = arith.constant 0 : i32
    %2 = arith.cmpi ne, %1, %c0_i32_0 : i32
    scf.if %2 {
      %cst_32 = arith.constant 0xFF800000 : f32
      %61 = vector.broadcast %cst_32 : f32 to vector<8x1xf32>
      %c0_33 = arith.constant 0 : index
      %c0_34 = arith.constant 0 : index
      %62 = vector.load %arg6[%c0_33, %c0_34] : memref<8x1xf32, #tpu.memory_space<vmem>>, vector<8x1xf32>
      tpu.vector_store %arg6[%c0_33, %c0_34], %61 {strides = array<i32>} : memref<8x1xf32, #tpu.memory_space<vmem>>, vector<8x1xf32>,
      %cst_35 = arith.constant 0.000000e+00 : f32
      %63 = vector.broadcast %cst_35 : f32 to vector<8x1xf32>
      %c0_36 = arith.constant 0 : index
      %c0_37 = arith.constant 0 : index
      %64 = vector.load %arg7[%c0_36, %c0_37] : memref<8x1xf32, #tpu.memory_space<vmem>>, vector<8x1xf32>
      tpu.vector_store %arg7[%c0_36, %c0_37], %63 {strides = array<i32>} : memref<8x1xf32, #tpu.memory_space<vmem>>, vector<8x1xf32>,
      %cst_38 = arith.constant 0.000000e+00 : f32
      %65 = vector.broadcast %cst_38 : f32 to vector<8x1xf32>
      %c0_39 = arith.constant 0 : index
      %c0_40 = arith.constant 0 : index
      %66 = vector.load %arg8[%c0_39, %c0_40] : memref<8x1xf32, #tpu.memory_space<vmem>>, vector<8x1xf32>
      tpu.vector_store %arg8[%c0_39, %c0_40], %65 {strides = array<i32>} : memref<8x1xf32, #tpu.memory_space<vmem>>, vector<8x1xf32>,
    } else {
    }
    %c0 = arith.constant 0 : index
    %c0_1 = arith.constant 0 : index
    %3 = vector.load %arg1[%c0, %c0_1] : memref<8x32xf32, #tpu.memory_space<vmem>>, vector<8x32xf32>
    %4 = arith.mulf %3, %3 : vector<8x32xf32>
    %cst = arith.constant dense<0.000000e+00> : vector<8xf32>
    %5 = vector.multi_reduction <add>, %4, %cst [1] : vector<8x32xf32> to vector<8xf32>
    %6 = vector.shape_cast %5 : vector<8xf32> to vector<8x1xf32>
    %7 = math.sqrt %6 : vector<8x1xf32>
    %cst_2 = arith.constant 9.99999996E-13 : f32
    %8 = vector.broadcast %cst_2 : f32 to vector<8x1xf32>
    %9 = arith.maximumf %7, %8 : vector<8x1xf32>
    %cst_3 = arith.constant 1.000000e+00 : f32
    %10 = vector.broadcast %cst_3 : f32 to vector<8x1xf32>
    %11 = arith.divf %10, %9 : vector<8x1xf32>
    %12 = arith.truncf %3 : vector<8x32xf32> to vector<8x32xbf16>
    %c0_4 = arith.constant 0 : index
    %c0_5 = arith.constant 0 : index
    %13 = vector.load %arg2[%c0_4, %c0_5] : memref<32x128xbf16, #tpu.memory_space<vmem>>, vector<32x128xbf16>
    %cst_6 = arith.constant dense<0.000000e+00> : vector<8x128xf32>
    %14 = tpu.matmul %12, %13, %cst_6 {dimension_numbers = #tpu.dot_dimension_numbers<[1], [0], [0], [1], [0, 0, 1, 1], [], []>} : vector<8x32xbf16>, vector<32x128xbf16>, vector<8x128xf32> -> vector<8x128xf32>
    %15 = vector.broadcast %11 : vector<8x1xf32> to vector<8x128xf32>
    %16 = arith.mulf %14, %15 : vector<8x128xf32>
    %c0_7 = arith.constant 0 : index
    %c0_8 = arith.constant 0 : index
    %17 = vector.load %arg3[%c0_7, %c0_8] : memref<1x128xf32, #tpu.memory_space<vmem>>, vector<1x128xf32>
    %18 = vector.broadcast %17 : vector<1x128xf32> to vector<8x128xf32>
    %19 = arith.mulf %16, %18 : vector<8x128xf32>
    %cst_9 = arith.constant 6.400000e+01 : f32
    %20 = vector.broadcast %cst_9 : f32 to vector<8x128xf32>
    %21 = arith.mulf %20, %19 : vector<8x128xf32>
    %c128_i32 = arith.constant 128 : i32
    %22 = arith.muli %arg0, %c128_i32 : i32
    %23 = tpu.iota {dimensions = array<i32: 1>} : vector<8x128xi32>
    %24 = vector.broadcast %22 : i32 to vector<8x128xi32>
    %25 = arith.addi %24, %23 : vector<8x128xi32>
    %c16_i32 = arith.constant 16 : i32
    %26 = vector.broadcast %c16_i32 : i32 to vector<8x128xi32>
    %27 = arith.cmpi slt, %25, %26 : vector<8x128xi32>
    %cst_10 = arith.constant -1.000000e+30 : f32
    %28 = vector.broadcast %cst_10 : f32 to vector<8x128xf32>
    %29 = arith.select %27, %21, %28 : vector<8x128xi1>, vector<8x128xf32>
    %c0_11 = arith.constant 0 : index
    %c0_12 = arith.constant 0 : index
    %30 = vector.load %arg4[%c0_11, %c0_12] : memref<8x1xi32, #tpu.memory_space<vmem>>, vector<8x1xi32>
    %31 = vector.broadcast %30 : vector<8x1xi32> to vector<8x128xi32>
    %32 = arith.cmpi eq, %25, %31 : vector<8x128xi32>
    %33 = arith.extui %32 : vector<8x128xi1> to vector<8x128xi32>
    %34 = arith.sitofp %33 : vector<8x128xi32> to vector<8x128xf32>
    %c0_13 = arith.constant 0 : index
    %c0_14 = arith.constant 0 : index
    %35 = vector.load %arg8[%c0_13, %c0_14] : memref<8x1xf32, #tpu.memory_space<vmem>>, vector<8x1xf32>
    %36 = arith.mulf %19, %34 : vector<8x128xf32>
    %cst_15 = arith.constant dense<0.000000e+00> : vector<8xf32>
    %37 = vector.multi_reduction <add>, %36, %cst_15 [1] : vector<8x128xf32> to vector<8xf32>
    %38 = vector.shape_cast %37 : vector<8xf32> to vector<8x1xf32>
    %39 = arith.addf %35, %38 : vector<8x1xf32>
    %c0_16 = arith.constant 0 : index
    %c0_17 = arith.constant 0 : index
    %40 = vector.load %arg8[%c0_16, %c0_17] : memref<8x1xf32, #tpu.memory_space<vmem>>, vector<8x1xf32>
    tpu.vector_store %arg8[%c0_16, %c0_17], %39 {strides = array<i32>} : memref<8x1xf32, #tpu.memory_space<vmem>>, vector<8x1xf32>,
    %c0_18 = arith.constant 0 : index
    %c0_19 = arith.constant 0 : index
    %41 = vector.load %arg6[%c0_18, %c0_19] : memref<8x1xf32, #tpu.memory_space<vmem>>, vector<8x1xf32>
    %cst_20 = arith.constant dense<0xFF800000> : vector<8xf32>
    %42 = vector.multi_reduction <maximumf>, %29, %cst_20 [1] : vector<8x128xf32> to vector<8xf32>
    %43 = vector.shape_cast %42 : vector<8xf32> to vector<8x1xf32>
    %44 = arith.maximumf %41, %43 : vector<8x1xf32>
    %c0_21 = arith.constant 0 : index
    %c0_22 = arith.constant 0 : index
    %45 = vector.load %arg6[%c0_21, %c0_22] : memref<8x1xf32, #tpu.memory_space<vmem>>, vector<8x1xf32>
    %46 = arith.subf %45, %44 : vector<8x1xf32>
    %47 = math.exp %46 : vector<8x1xf32>
    %c0_23 = arith.constant 0 : index
    %c0_24 = arith.constant 0 : index
    %48 = vector.load %arg7[%c0_23, %c0_24] : memref<8x1xf32, #tpu.memory_space<vmem>>, vector<8x1xf32>
    %49 = arith.mulf %47, %48 : vector<8x1xf32>
    %50 = vector.broadcast %44 : vector<8x1xf32> to vector<8x128xf32>
    %51 = arith.subf %29, %50 : vector<8x128xf32>
    %52 = math.exp %51 : vector<8x128xf32>
    %cst_25 = arith.constant dense<0.000000e+00> : vector<8xf32>
    %53 = vector.multi_reduction <add>, %52, %cst_25 [1] : vector<8x128xf32> to vector<8xf32>
    %54 = vector.shape_cast %53 : vector<8xf32> to vector<8x1xf32>
    %55 = arith.addf %49, %54 : vector<8x1xf32>
    %c0_26 = arith.constant 0 : index
    %c0_27 = arith.constant 0 : index
    %56 = vector.load %arg7[%c0_26, %c0_27] : memref<8x1xf32, #tpu.memory_space<vmem>>, vector<8x1xf32>
    tpu.vector_store %arg7[%c0_26, %c0_27], %55 {strides = array<i32>} : memref<8x1xf32, #tpu.memory_space<vmem>>, vector<8x1xf32>,
    %c0_28 = arith.constant 0 : index
    %c0_29 = arith.constant 0 : index
    %57 = vector.load %arg6[%c0_28, %c0_29] : memref<8x1xf32, #tpu.memory_space<vmem>>, vector<8x1xf32>
    tpu.vector_store %arg6[%c0_28, %c0_29], %44 {strides = array<i32>} : memref<8x1xf32, #tpu.memory_space<vmem>>, vector<8x1xf32>,
    %c0_i32_30 = arith.constant 0 : i32
    %58 = arith.cmpi eq, %arg0, %c0_i32_30 : i32
    %59 = arith.extui %58 : i1 to i32
    %c0_i32_31 = arith.constant 0 : i32
    %60 = arith.cmpi ne, %59, %c0_i32_31 : i32
    scf.if %60 {
      %c0_32 = arith.constant 0 : index
      %c0_33 = arith.constant 0 : index
      %61 = vector.load %arg6[%c0_32, %c0_33] : memref<8x1xf32, #tpu.memory_space<vmem>>, vector<8x1xf32>
      %c0_34 = arith.constant 0 : index
      %c0_35 = arith.constant 0 : index
      %62 = vector.load %arg7[%c0_34, %c0_35] : memref<8x1xf32, #tpu.memory_space<vmem>>, vector<8x1xf32>
      %c0_36 = arith.constant 0 : index
      %c0_37 = arith.constant 0 : index
      %63 = vector.load %arg8[%c0_36, %c0_37] : memref<8x1xf32, #tpu.memory_space<vmem>>, vector<8x1xf32>
      %cst_38 = arith.constant -0.99999988 : f32
      %cst_39 = arith.constant 0.99999988 : f32
      %64 = vector.broadcast %cst_38 : f32 to vector<8x1xf32>
      %65 = arith.maximumf %64, %63 : vector<8x1xf32>
      %66 = vector.broadcast %cst_39 : f32 to vector<8x1xf32>
      %67 = arith.minimumf %66, %65 : vector<8x1xf32>
      %cst_40 = arith.constant 0.87758255 : f32
      %68 = vector.broadcast %cst_40 : f32 to vector<8x1xf32>
      %69 = arith.mulf %67, %68 : vector<8x1xf32>
      %70 = arith.mulf %67, %67 : vector<8x1xf32>
      %cst_41 = arith.constant 1.000000e+00 : f32
      %71 = vector.broadcast %cst_41 : f32 to vector<8x1xf32>
      %72 = arith.subf %71, %70 : vector<8x1xf32>
      %73 = math.sqrt %72 : vector<8x1xf32>
      %cst_42 = arith.constant 0.47942555 : f32
      %74 = vector.broadcast %cst_42 : f32 to vector<8x1xf32>
      %75 = arith.mulf %73, %74 : vector<8x1xf32>
      %76 = arith.subf %69, %75 : vector<8x1xf32>
      %cst_43 = arith.constant 6.400000e+01 : f32
      %77 = vector.broadcast %cst_43 : f32 to vector<8x1xf32>
      %78 = arith.mulf %77, %76 : vector<8x1xf32>
      %cst_44 = arith.constant 6.400000e+01 : f32
      %79 = vector.broadcast %cst_44 : f32 to vector<8x1xf32>
      %80 = arith.mulf %79, %63 : vector<8x1xf32>
      %81 = arith.subf %80, %61 : vector<8x1xf32>
      %82 = math.exp %81 : vector<8x1xf32>
      %83 = arith.subf %62, %82 : vector<8x1xf32>
      %cst_45 = arith.constant 0.000000e+00 : f32
      %84 = vector.broadcast %cst_45 : f32 to vector<8x1xf32>
      %85 = arith.maximumf %83, %84 : vector<8x1xf32>
      %86 = math.log %85 : vector<8x1xf32>
      %87 = arith.addf %86, %61 : vector<8x1xf32>
      %88 = arith.maximumf %78, %87 : vector<8x1xf32>
      %89 = arith.subf %78, %88 : vector<8x1xf32>
      %90 = math.exp %89 : vector<8x1xf32>
      %91 = arith.subf %87, %88 : vector<8x1xf32>
      %92 = math.exp %91 : vector<8x1xf32>
      %93 = arith.addf %90, %92 : vector<8x1xf32>
      %94 = math.log %93 : vector<8x1xf32>
      %95 = arith.addf %88, %94 : vector<8x1xf32>
      %96 = arith.subf %78, %95 : vector<8x1xf32>
      %97 = vector.shape_cast %96 : vector<8x1xf32> to vector<1x8x1xf32>
      %cst_46 = arith.constant dense<0.000000e+00> : vector<1xf32>
      %98 = vector.multi_reduction <add>, %97, %cst_46 [1, 2] : vector<1x8x1xf32> to vector<1xf32>
      %99 = vector.shape_cast %98 : vector<1xf32> to vector<1x1x1xf32>
      %100 = vector.extract %99[0, 0, 0] : f32 from vector<1x1x1xf32>
      %cst_47 = arith.constant 8.000000e+00 : f32
      %101 = arith.divf %100, %cst_47 : f32
      %cst_48 = arith.constant 0.000000e+00 : f32
      %102 = arith.subf %cst_48, %101 : f32
      %103 = vector.broadcast %102 : f32 to vector<1x1xf32>
      %c0_49 = arith.constant 0 : index
      %c0_50 = arith.constant 0 : index
      %104 = vector.load %arg5[%c0_49, %c0_50] : memref<1x1xf32, #tpu.memory_space<vmem>>, vector<1x1xf32>
      tpu.vector_store %arg5[%c0_49, %c0_50], %103 {strides = array<i32>} : memref<1x1xf32, #tpu.memory_space<vmem>>, vector<1x1xf32>,
    } else {
    }
    return
  }
  func.func @transform_0(%arg0: i32) -> (i32, i32) {
    %c0_i32 = arith.constant 0 : i32
    %c0_i32_0 = arith.constant 0 : i32
    %c0_i32_1 = arith.constant 0 : i32
    return %c0_i32, %c0_i32_0 : i32, i32
  }
  func.func @transform_1(%arg0: i32) -> (i32, i32) {
    %c0_i32 = arith.constant 0 : i32
    %c0_i32_0 = arith.constant 0 : i32
    return %c0_i32, %arg0 : i32, i32
  }
  func.func @transform_2(%arg0: i32) -> (i32, i32) {
    %c0_i32 = arith.constant 0 : i32
    %c0_i32_0 = arith.constant 0 : i32
    return %c0_i32, %arg0 : i32, i32
  }
  func.func @transform_3(%arg0: i32) -> (i32, i32) {
    %c0_i32 = arith.constant 0 : i32
    %c0_i32_0 = arith.constant 0 : i32
    %c0_i32_1 = arith.constant 0 : i32
    return %c0_i32, %c0_i32_0 : i32, i32
  }
  func.func @transform_4(%arg0: i32) -> (i32, i32) {
    %c0_i32 = arith.constant 0 : i32
    %c0_i32_0 = arith.constant 0 : i32
    %c0_i32_1 = arith.constant 0 : i32
    return %c0_i32, %c0_i32_0 : i32, i32
  }
}

</mosaic_0001>

<bundles_post_ra>
// kernel: tpu_custom_call.1
= control target key start
LH: loop header
LB: loop body
LE: loop exit
PB: predicated region body
PF: predicated region fallthrough
CT: control target
= control target key end

     0   :  { %9 = vsyncpa [#allocation6], 0  ;;  %s416_s0 = inlined_call_operand.vmem [shape: f32[8,32], index: 0, kind: input, shape index: {}]   ;;  %s417_s1 = inlined_call_operand.hbm [shape: bf16[32,128], index: 1, kind: input, shape index: {}]   ;;  %s418_s2 = inlined_call_operand.vmem [shape: f32[1,128], index: 2, kind: input, shape index: {}]   ;;  %s419_s3 = inlined_call_operand.vmem [shape: s32[8,1], index: 3, kind: input, shape index: {}]   ;;  %s420_s4 = inlined_call_operand.hbm [shape: f32[1,1], index: 4, kind: output, shape index: {}]  }
   0x1   :  { %10 = vsyncpa [#allocation7], 0  ;;  %s343_s15 = smov [#allocation5]   ;;  %s295_s19 = scalar_lea.hbm %s417_s1, 256 }
   0x2   :  { %s18_s16 = sshll.u32 %s343_s15, 4  ;;  %p296_p0 = scmp.ne.s32.totalorder %s417_s1, %s295_s19  ;;  %s19_s16 = int_to_ptr.vmem [resolvable:$true] %s18_s16 }
   0x3   :  { %p299_p1 = scmp.lt.u32.totalorder %s295_s19, %s417_s1 }
   0x5   :  { %p301_p2 = pnand %p299_p1, %p296_p0 }
   0x7   :  { %304 = shalt.err (!%p301_p2)
}
   0x8   :  { %s305_s24 = scalar_lea.vmem %s19_s16, 256  ;;  %p310_p4 = scmp.lt.s32.totalorder %s19_s16, %s19_s16 }
   0x9   :  { %p306_p3 = scmp.ne.s32.totalorder %s19_s16, %s305_s24  ;;  %p311_p5 = scmp.lt.s32.totalorder %s305_s24, %s305_s24 }
   0xb   :  { %p312_p6 = por %p311_p5, %p310_p4 }
   0xd   :  { %p313_p7 = pnand %p312_p6, %p306_p3 }
   0xf   :  { %316 = shalt.err (!%p313_p7)
}
  0x10   :  { %s344_s25 = smov 64   ;;  %s345_s26 = smov 4  }
  0x11   :  { %24 = dma.hbm_to_vmem [thread:$0]  %s417_s1, 256, %s19_s16, [#allocation6], %s344_s25, %s344_s25, %s345_s26  }
  0x12   :  { %339 = dma.done.wait [#allocation6], 256  }
  0x13   :  { %340 = vsyncadd [#allocation6], 4294967040  ;;  %v346_v0 = vmov 0.0   ;;  %vm347_vm0 = vmmov 0   ;;  %v348_v1 = vmov 0   ;;  %v273_v2 = vld [vmem:[#allocation5] sm:$0xff]   ;;  %v128_v17 = vlaneseq }
  0x14   :  { %253 = vmatprep.subr.bf16.mxu0 %v346_v0  ;;  %257 = vmatprep.mubr.msk.bf16.mxu0 %vm347_vm0, %v346_v0  ;;  %v274_v3 = vld [vmem:[#allocation5 + $0x8] sm:$0xff]   ;;  %vm43_vm1 = vcmask 261120   ;;  %vm37_vm2 = vcmask 7168   ;;  %v349_v9 = vmov -inf   ;;  %s350_s7 = smov [#allocation8]   ;;  %vm227_vm9 = vcmask 0  }
  0x15   :  { %271 = vset.pattern.permute.xlu1 %v348_v1  ;;  %272 = vset.pattern.permute.xlu0 %v348_v1  ;;  %v41_v4 = vld [vmem:[%s416_s0] sm:$0xff]  ;;  %38 = vst.msk [vmem:[#allocation2] sm:$0xff] %vm37_vm2, %v349_v9  ;;  %39 = vst.msk [vmem:[#allocation3] sm:$0xff] %vm37_vm2, %v346_v0  ;;  %v129_v21 = vand.u32 127, %v128_v17  ;;  %s235_s8 = sshll.u32 %s350_s7, 4  ;;  %s236_s8 = int_to_ptr.vmem [resolvable:$true] %s235_s8 }
  0x16   :  { %254 = vmatpush3.bf16.msra.mxu0 %v273_v2  ;;  %v134_v5 = vld [vmem:[%s419_s3] sm:$0xff]  ;;  %v42_v6 = vmul.f32 %v41_v4, %v41_v4  ;;  %v57_v7 = vpack.c.bf16 %v41_v4, %v41_v4  ;;  %40 = vst.msk [vmem:[#allocation4] sm:$0xff] %vm37_vm2, %v346_v0  ;;  %s317_s10 = scalar_lea.vmem %s236_s8, 16  ;;  %s321_s11 = scalar_lea.vmem %s236_s8, 32 }
  0x17   :  { %255 = vmatprep.subr.bf16.mxu0 %v346_v0  ;;  %136 = vperm.xlu1 %271, %v134_v5   ;;  %v247_v20 = vld [vmem:[%s418_s2] ss:$0 sm:$0xff]  ;;  %vm132_vm6 = vcmp.lt.s32.totalorder %v129_v21, 16  ;;  %p318_p8 = scmp.ne.s32.totalorder %s236_s8, %s317_s10  ;;  %p322_p9 = scmp.lt.s32.totalorder %s236_s8, %s236_s8 }
  0x18   :  { %v44_v8 = vsel %vm43_vm1, %v42_v6, 0.0  ;;  %p323_p10 = scmp.lt.s32.totalorder %s321_s11, %s317_s10 }
  0x19   :  { %45 = vadd.xlane.f32.xlu0 %v44_v8 }
  0x1a   :  { %256 = vmatpush3.bf16.msra.mxu0 %v274_v3  ;;  %p324_p11 = por %p323_p10, %p322_p9 }
  0x1c   :  { %v148_v32 = vld [vmem:[#allocation2] sm:$0xff]  ;;  %v155_v52 = vld [vmem:[#allocation3] sm:$0xff]  ;;  %p325_p12 = pnand %p324_p11, %p318_p8 }
  0x1d   :  { %258 = vmatmul.mubr.msk.bf16.vlgmr.msra.gmra.mrb[0].mxu0 %vm43_vm1, %v57_v7  ;;  %v141_v35 = vld [vmem:[#allocation4] sm:$0xff] }
  0x96   :  { %v137_v24 = vpop.permute.xlu1 %136 }
  0x97   :  { %vm138_vm5 = vcmp.eq.s32.totalorder %v129_v21, %v137_v24 }
  0x98   :  { %v248_v29 = vsel %vm138_vm5, 1.0, %v346_v0 }
  0xa6   :  { %v46_v10 = vpop.xlane.xlu0 %45 }
  0xa7   :  { %275 = vrsqrt.f32 %v46_v10  ;;  %vm49_vm3 = vcmp.eq.f32.partialorder %v46_v10, inf  ;;  %v52_v13 = vand.u32 2147483648, %v46_v10  ;;  %vm51_vm4 = vcmp.eq.f32.partialorder %v46_v10, 0.0 }
  0xb1   :  { %v276_v11 = vpop.eup %275 }
  0xb2   :  { %v48_v12 = vmul.f32 %v276_v11, %v46_v10 }
  0xb4   :  { %v50_v14 = vsel %vm49_vm3, %v46_v10, %v48_v12 }
  0xb5   :  { %v53_v15 = vsel %vm51_vm4, %v52_v13, %v50_v14 }
  0xb6   :  { %v54_v16 = vmax.f32 %v53_v15, 1e-12 }
  0xb8   :  { %277 = vrcp.f32 %v54_v16 }
  0xc2   :  { %v278_v18 = vpop.eup %277 }
  0xf0   :  { %v111_v19 = vpop.f32.mrb[0].mxu0 }
  0xf1   :  { %v117_v22 = vmul.f32 %v278_v18, %v111_v19  ;;  %v259_v23 = vpop.f32.mrb[1].mxu0 }
  0xf2   :  { %v114_v25 = vpop.f32.mrb[2].mxu0 }
  0xf3   :  { %v125_v26 = vmul.f32 %v247_v20, %v117_v22  ;;  %v260_v27 = vpop.f32.mrb[3].mxu0 }
  0xf5   :  { %v126_v28 = vmul.f32 64.0, %v125_v26  ;;  %v142_v31 = vmul.f32 %v248_v29, %v125_v26 }
  0xf7   :  { %v133_v30 = vsel %vm132_vm6, %v126_v28, -1e+30 }
  0xf8   :  { %149 = vmax.xlane.f32.xlu0 %v133_v30 }
  0xfc   :  { %143 = vadd.xlane.f32.xlu0 %v142_v31 }
 0x185   :  { %v150_v33 = vpop.xlane.xlu0 %149 }
 0x186   :  { %v151_v34 = vmax.f32 %v148_v32, %v150_v33 }
 0x188   :  { %v152_v36 = vsub.f32 %v148_v32, %v151_v34  ;;  %169 = vst.msk [vmem:[#allocation2] sm:$0xff] %vm37_vm2, %v151_v34  ;;  %159 = vperm.xlu1 %271, %v151_v34  }
 0x189   :  { %v144_v37 = vpop.xlane.xlu0 %143 }
 0x18a   :  { %v145_v38 = vadd.f32 %v144_v37, %v141_v35  ;;  %v153_v43 = vmul.f32 1.442695, %v152_v36 }
 0x18c   :  { %147 = vst.msk [vmem:[#allocation4] sm:$0xff] %vm37_vm2, %v145_v38 }
 0x18f   :  { %v173_v48 = vld [vmem:[#allocation2] sm:$0xff] }
 0x193   :  { %v175_v44 = vld [vmem:[#allocation4] sm:$0xff] }
 0x194   :  { %v249_v45 = vclamps-f32 %v175_v44, 0.9999999  ;;  %v191_v46 = vmul.f32 64.0, %v175_v44 }
 0x196   :  { %v179_v47 = vmul.f32 %v249_v45, %v249_v45  ;;  %v192_v49 = vsub.f32 %v191_v46, %v173_v48  ;;  %v178_v3 = vmul.f32 0.87758255, %v249_v45 }
 0x198   :  { %v180_v50 = vsub.f32 1.0, %v179_v47  ;;  %v193_v53 = vmul.f32 1.442695, %v192_v49 }
 0x19a   :  { %vm183_vm7 = vcmp.eq.f32.partialorder %v180_v50, inf  ;;  %v186_v0 = vand.u32 2147483648, %v180_v50  ;;  %vm185_vm8 = vcmp.eq.f32.partialorder %v180_v50, 0.0 }
 0x207   :  { %v160_v39 = vpop.permute.xlu1 %159 }
 0x208   :  { %v162_v40 = vsub.f32 %v133_v30, %v160_v39 }
 0x20a   :  { %v163_v41 = vmul.f32 1.442695, %v162_v40 }
 0x20c   :  { %279 = vpow2.f32 %v163_v41 }
 0x20d   :  { %281 = vpow2.f32 %v153_v43 }
 0x20e   :  { %283 = vrsqrt.f32 %v180_v50 }
 0x20f   :  { %285 = vpow2.f32 %v193_v53 }
 0x216   :  { %v280_v42 = vpop.eup %279 }
 0x217   :  { %165 = vadd.xlane.f32.xlu1 %v280_v42  ;;  %v282_v51 = vpop.eup %281 }
 0x218   :  { %v156_v54 = vmul.f32 %v282_v51, %v155_v52  ;;  %v284_v57 = vpop.eup %283 }
 0x219   :  { %v286_v58 = vpop.eup %285  ;;  %v182_v60 = vmul.f32 %v284_v57, %v180_v50 }
 0x21b   :  { %v184_v63 = vsel %vm183_vm7, %v180_v50, %v182_v60 }
 0x21c   :  { %v187_v1 = vsel %vm185_vm8, %v186_v0, %v184_v63 }
 0x21d   :  { %v188_v2 = vmul.f32 0.47942555, %v187_v1 }
 0x21f   :  { %v189_v4 = vsub.f32 %v178_v3, %v188_v2 }
 0x221   :  { %v190_v7 = vmul.f32 64.0, %v189_v4 }
 0x2a4   :  { %v166_v55 = vpop.xlane.xlu1 %165 }
 0x2a5   :  { %v167_v56 = vadd.f32 %v166_v55, %v156_v54 }
 0x2a7   :  { %168 = vst.msk [vmem:[#allocation3] sm:$0xff] %vm37_vm2, %v167_v56 }
 0x2ae   :  { %v174_v59 = vld [vmem:[#allocation3] sm:$0xff] }
 0x2af   :  { %v195_v61 = vsub.f32 %v174_v59, %v286_v58 }
 0x2b1   :  { %v196_v62 = vmax.f32 %v195_v61, 0.0 }
 0x2b3   :  { %287 = vlog2.f32 %v196_v62 }
 0x2bd   :  { %v288_v5 = vpop.eup %287 }
 0x2be   :  { %v198_v6 = vmul.f32 0.6931472, %v288_v5 }
 0x2c0   :  { %v199_v8 = vadd.f32 %v198_v6, %v173_v48 }
 0x2c2   :  { %v200_v9 = vmax.f32 %v190_v7, %v199_v8 }
 0x2c4   :  { %v201_v10 = vsub.f32 %v190_v7, %v200_v9  ;;  %v204_v11 = vsub.f32 %v199_v8, %v200_v9 }
 0x2c6   :  { %v202_v12 = vmul.f32 1.442695, %v201_v10  ;;  %v205_v13 = vmul.f32 1.442695, %v204_v11 }
 0x2c8   :  { %289 = vpow2.f32 %v202_v12 }
 0x2c9   :  { %291 = vpow2.f32 %v205_v13 }
 0x2d2   :  { %v290_v14 = vpop.eup %289 }
 0x2d3   :  { %v292_v15 = vpop.eup %291 }
 0x2d4   :  { %v207_v16 = vadd.f32 %v292_v15, %v290_v14 }
 0x2d6   :  { %293 = vlog2.f32 %v207_v16 }
 0x2e0   :  { %v294_v17 = vpop.eup %293 }
 0x2e1   :  { %v209_v18 = vmul.f32 0.6931472, %v294_v17 }
 0x2e3   :  { %v210_v19 = vadd.f32 %v209_v18, %v200_v9 }
 0x2e5   :  { %v211_v20 = vsub.f32 %v190_v7, %v210_v19 }
 0x2e7   :  { %v212_v21 = vsel %vm37_vm2, %v211_v20, 0.0 }
 0x2e8   :  { %213 = vadd.xlane.f32.xlu0 %v212_v21 }
 0x375   :  { %v214_v22 = vpop.xlane.xlu0 %213 }
 0x376   :  { %v215_v23 = vrot.slane %v214_v22, 4 }
 0x378   :  { %v216_v24 = vadd.f32 %v215_v23, %v214_v22 }
 0x37a   :  { %v217_v25 = vrot.slane %v216_v24, 2 }
 0x37c   :  { %v218_v26 = vadd.f32 %v217_v25, %v216_v24 }
 0x37e   :  { %v219_v27 = vrot.slane %v218_v26, 1 }
 0x380   :  { %v220_v28 = vadd.f32 %v219_v27, %v218_v26 }
 0x382   :  { %261 = vpush %v220_v28 }
 0x3b3   :  { %s262_s2 = spop %261 }
 0x3b4   :  { %s224_s3 = smul.f32 0.125, %s262_s2 }
 0x3b6   :  { %s225_s9 = ssub.f32 0.0, %s224_s3 }
 0x3b8   :  { %v226_v29 = vstv %s225_s9 }
 0x3b9   :  { %228 = vst.msk [vmem:[#allocation8] sm:$0x1] %vm227_vm9, %v226_v29 }
 0x3ba   :  { %328 = shalt.err (!%p325_p12)
}
 0x3bb   :  { %s329_s14 = scalar_lea.hbm %s420_s4, 16 }
 0x3bc   :  { %p330_p13 = scmp.ne.s32.totalorder %s420_s4, %s329_s14  ;;  %p333_p0 = scmp.lt.u32.totalorder %s329_s14, %s420_s4 }
 0x3be   :  { %p335_p1 = pnand %p333_p0, %p330_p13 }
 0x3c0   :  { %338 = shalt.err (!%p335_p1)
}
 0x3c1   :  { %238 = dma.vmem_to_hbm [thread:$0]  %s236_s8, 16, %s420_s4, [#allocation7]  }
 0x3c2   :  { %341 = dma.done.wait [#allocation7], 16  }
 0x3c3   :  { %342 = vsyncadd [#allocation7], 4294967280 }
 0x3c4   :  { %242 = vsyncpa [#allocation6], 1 }
 0x3c5   :  { %243 = vsyncpa [#allocation7], 1 }

</bundles_post_ra>
